<compile_context>
chip_gen: v5e
topology: v5e:2x2
jax: 0.10.0
libtpu: 0.0.40
codegen_flags: <defaults>
</compile_context>

<pallas_src>
import functools

import numpy as np
import jax
import jax.numpy as jnp
from jax import lax
from jax.experimental import pallas as pl
from jax.experimental.pallas import tpu as pltpu


# ------------------------- host-side constant builders ----------------------

def _round_up(x, m):
    return ((x + m - 1) // m) * m


def _interp_matrix(out_size, in_size):
    """Row-stochastic bilinear interpolation matrix, align_corners=True."""
    if out_size == 1:
        src = np.zeros((1,), np.float64)
    else:
        src = np.arange(out_size, dtype=np.float64) * (in_size - 1) / (out_size - 1)
    i0 = np.clip(np.floor(src).astype(np.int64), 0, in_size - 1)
    i1 = np.minimum(i0 + 1, in_size - 1)
    w1 = (src - i0).astype(np.float32)
    w0 = 1.0 - w1
    R = np.zeros((out_size, in_size), np.float32)
    R[np.arange(out_size), i0] += w0
    R[np.arange(out_size), i1] += w1
    return R


def _bilinear_kron(h_in, w_in, h_out, w_out, pad_rows, pad_cols):
    """Flattened-spatial resize operator M with out_flat = x_flat @ M (zero padded)."""
    # TODO(synk): separable (Rw then Rh) resize for large images -- the kron
    # constant scales as (H*W)^2 and will not fit v7x's 64 MiB VMEM.
    Rh = _interp_matrix(h_out, h_in)                 # (h_out, h_in)
    Rw = _interp_matrix(w_out, w_in)                 # (w_out, w_in)
    K = np.kron(Rh, Rw)                              # (h_out*w_out, h_in*w_in)
    M = np.zeros((pad_rows, pad_cols), np.float32)
    M[: h_in * w_in, : h_out * w_out] = K.T
    return M


def _stride2_select(h_in, w_in, pad_rows, pad_cols):
    """0/1 matrix selecting even spatial positions (stride-2 3x3 conv, pad 1)."""
    h_out, w_out = (h_in - 1) // 2 + 1, (w_in - 1) // 2 + 1
    S = np.zeros((pad_rows, pad_cols), np.float32)
    for ho in range(h_out):
        for wo in range(w_out):
            S[2 * ho * w_in + 2 * wo, ho * w_out + wo] = 1.0
    return S


def _tap_masks(H, W, pad_to):
    """(9, 1, pad_to) validity mask per 3x3 tap for a flattened (H, W) image."""
    hw = H * W
    m = np.zeros((9, 1, pad_to), np.float32)
    hh = np.repeat(np.arange(H), W)
    ww = np.tile(np.arange(W), H)
    k = 0
    for dh in (-1, 0, 1):
        for dw in (-1, 0, 1):
            valid = ((hh + dh >= 0) & (hh + dh < H) &
                     (ww + dw >= 0) & (ww + dw < W))
            m[k, 0, :hw] = valid.astype(np.float32)
            k += 1
    return m


def _stack_tap_weights(w_hwio, scale, c_midp):
    """BN-folded 3x3 weights as ONE (c_out, 9*c_midp) matrix (tap-major columns)."""
    _, _, c_mid, c_out = w_hwio.shape
    wf = (np.asarray(w_hwio, np.float32)
          * np.asarray(scale, np.float32)[None, None, None, :])
    W = np.zeros((c_out, 9 * c_midp), np.float32)
    for kh in range(3):
        for kw in range(3):
            k = kh * 3 + kw
            W[:, k * c_midp: k * c_midp + c_mid] = wf[kh, kw].T   # (c_out, c_mid)
    return W


# --------------------------------- kernel -----------------------------------

def _conv3x3_stacked(h, w_ref, b_ref, m_ref, row_w, mm_dtype):
    """3x3 / stride-1 / pad-1 conv as ONE matmul on a channel-major activation.

    h:      (c_midp, HWp) f32 activation, spatial flattened on lanes
    w_ref:  (c_out, 9*c_midp) BN-folded stacked tap weights (tap-major columns)
    b_ref:  (c_out, 1) folded BN bias
    m_ref:  (9, 1, HWp) per-tap validity masks (0 on out-of-image / pad lanes)
    row_w:  image row width W (python int)
    """
    hwp = h.shape[1]
    taps = []
    k = 0
    for dh in (-1, 0, 1):
        for dw in (-1, 0, 1):
            s = dh * row_w + dw
            # want shifted[:, p] == h[:, p + s]  ->  roll by (-s) mod HWp (XLU)
            shifted = h if s == 0 else pltpu.roll(h, (-s) % hwp, axis=1)
            taps.append(shifted * m_ref[k])
            k += 1
    # c_midp is a multiple of 8, so this sublane concat is vreg-aligned.
    stacked = jnp.concatenate(taps, axis=0)                     # (9*c_midp, HWp)
    acc = jnp.dot(w_ref[...], stacked.astype(mm_dtype),
                  preferred_element_type=jnp.float32)
    return jnp.maximum(acc + b_ref[...], 0.0)


def _fused_block_kernel(x1_ref, x0_ref,
                        w1_ref, b1_ref, w2_ref, b2_ref, m1_ref,
                        w3_ref, b3_ref, w4_ref, b4_ref, m0_ref,
                        k0_ref, *rest, row_w_net, row_w_up, down_same, mm_dtype):
    if down_same:
        (o_ref,) = rest
        k1_ref = sel_ref = None
    else:
        k1_ref, sel_ref, o_ref = rest

    x1 = x1_ref[0]                                   # (in_c,  HWa_p)
    x0 = x0_ref[0]                                   # (in_c2, HWb_p)

    # ---- net branch: 1x1 conv (BN folded) + ReLU, then stacked 3x3 conv + ReLU
    h1 = jnp.maximum(
        jnp.dot(w1_ref[...], x1, preferred_element_type=jnp.float32)
        + b1_ref[...], 0.0)
    net = _conv3x3_stacked(h1, w2_ref, b2_ref, m1_ref, row_w_net, mm_dtype)

    # ---- up branch
    h0 = jnp.maximum(
        jnp.dot(w3_ref[...], x0, preferred_element_type=jnp.float32)
        + b3_ref[...], 0.0)
    up = _conv3x3_stacked(h0, w4_ref, b4_ref, m0_ref, row_w_up, mm_dtype)

    # ---- branch 1: bilinear resize(up_net(x0)) as one matmul (zero rows on
    #      lane padding, zero columns on output lane padding)
    out1 = jnp.dot(up.astype(mm_dtype), k0_ref[...],
                   preferred_element_type=jnp.float32)

    # ---- branch 0 (resize of raw x1) and branch 2 (net output)
    if down_same:
        out0 = x1
        out2 = net
    else:
        out0 = jnp.dot(x1.astype(mm_dtype), k1_ref[...],
                       preferred_element_type=jnp.float32)
        # TODO(synk): gather only the even output positions directly into the
        # tap stack instead of full stride-1 conv + selection matmul.
        out2 = jnp.dot(net.astype(mm_dtype), sel_ref[...],
                       preferred_element_type=jnp.float32)

    # ---- single lane-dense, full-block store of the channel-concatenated output
    o_ref[0] = jnp.concatenate([out0, out1, out2], axis=0).astype(o_ref.dtype)


# ------------------------------ module wrapper -------------------------------

def make_conv_upsample_block(params, x1_shape, x0_shape, down_type="same",
                             matmul_dtype=jnp.float32):
    """One-time prep of all constants; returns a jitted forward(x0, x1)."""
    N, in_c, Ha, Wa = x1_shape
    N2, in_c2, Hb, Wb = x0_shape
    assert N == N2
    mid_c = params["w1"].shape[1]
    end_c = params["w2"].shape[3]
    mid_c2 = params["w3"].shape[1]
    reduce_c = params["w4"].shape[3]
    down_same = (down_type == "same")

    if down_same:
        Hout, Wout = Ha, Wa
    else:
        Hout, Wout = (Ha - 1) // 2 + 1, (Wa - 1) // 2 + 1
    hw_a, hw_b, hw_out = Ha * Wa, Hb * Wb, Hout * Wout
    hw_ap, hw_bp = _round_up(hw_a, 128), _round_up(hw_b, 128)
    out_lanes = hw_ap if down_same else _round_up(hw_out, 128)   # lane-dense out
    mid_cp, mid_c2p = _round_up(mid_c, 8), _round_up(mid_c2, 8)  # aligned stacks
    c_tot = in_c + reduce_c + end_c

    # ---- one-time host prep: BN fold, tap stacking, masks, resize matrices ----
    p = {k: np.asarray(v, np.float32) for k, v in params.items()}

    w1m = np.zeros((mid_cp, in_c), np.float32)
    w1m[:mid_c] = (p["w1"] * p["s1"][None, :]).T
    b1c = np.zeros((mid_cp, 1), np.float32)
    b1c[:mid_c, 0] = p["b1"]
    w3m = np.zeros((mid_c2p, in_c2), np.float32)
    w3m[:mid_c2] = (p["w3"] * p["s3"][None, :]).T
    b3c = np.zeros((mid_c2p, 1), np.float32)
    b3c[:mid_c2, 0] = p["b3"]

    W2 = _stack_tap_weights(p["w2"], p["s2"], mid_cp)      # (end_c, 9*mid_cp)
    W4 = _stack_tap_weights(p["w4"], p["s4"], mid_c2p)     # (reduce_c, 9*mid_c2p)
    b2c = p["b2"].reshape(end_c, 1)
    b4c = p["b4"].reshape(reduce_c, 1)

    m1 = _tap_masks(Ha, Wa, hw_ap)
    m0 = _tap_masks(Hb, Wb, hw_bp)
    k0 = _bilinear_kron(Hb, Wb, Hout, Wout, pad_rows=hw_bp, pad_cols=out_lanes)

    consts = [
        jnp.asarray(w1m), jnp.asarray(b1c),
        jnp.asarray(W2, dtype=matmul_dtype), jnp.asarray(b2c), jnp.asarray(m1),
        jnp.asarray(w3m), jnp.asarray(b3c),
        jnp.asarray(W4, dtype=matmul_dtype), jnp.asarray(b4c), jnp.asarray(m0),
        jnp.asarray(k0, dtype=matmul_dtype),
    ]
    if not down_same:
        k1 = _bilinear_kron(Ha, Wa, Hout, Wout, pad_rows=hw_ap, pad_cols=out_lanes)
        sel = _stride2_select(Ha, Wa, pad_rows=hw_ap, pad_cols=out_lanes)
        consts += [jnp.asarray(k1, dtype=matmul_dtype),
                   jnp.asarray(sel, dtype=matmul_dtype)]

    def bspec(arr):
        if arr.ndim == 2:
            return pl.BlockSpec(arr.shape, lambda n: (0, 0))
        return pl.BlockSpec(arr.shape, lambda n: (0, 0, 0))

    in_specs = [
        pl.BlockSpec((1, in_c, hw_ap), lambda n: (n, 0, 0)),
        pl.BlockSpec((1, in_c2, hw_bp), lambda n: (n, 0, 0)),
    ] + [bspec(a) for a in consts]

    kernel = functools.partial(
        _fused_block_kernel, row_w_net=Wa, row_w_up=Wb,
        down_same=down_same, mm_dtype=matmul_dtype)

    call = pl.pallas_call(
        kernel,
        out_shape=jax.ShapeDtypeStruct((N, c_tot, out_lanes), jnp.float32),
        grid=(N,),
        in_specs=in_specs,
        out_specs=pl.BlockSpec((1, c_tot, out_lanes), lambda n: (n, 0, 0)),
        compiler_params=pltpu.CompilerParams(
            dimension_semantics=("parallel",)),
    )

    @jax.jit
    def forward(x0, x1):
        # NCHW -> channel-major (C, H*W): free reshape, spatial on lanes.
        x1f = x1.reshape(N, in_c, hw_a)
        if hw_ap != hw_a:
            x1f = jnp.pad(x1f, ((0, 0), (0, 0), (0, hw_ap - hw_a)))
        x0f = x0.reshape(N, in_c2, hw_b)
        if hw_bp != hw_b:
            x0f = jnp.pad(x0f, ((0, 0), (0, 0), (0, hw_bp - hw_b)))
        out = call(x1f, x0f, *consts)
        if out_lanes != hw_out:
            out = out[:, :, :hw_out]
        return out.reshape(N, c_tot, Hout, Wout)

    return forward


# ----------------------- deterministic parameter init ------------------------

def _bn_fold(c, eps=1e-5):
    gamma = 1.0 + 0.05 * jnp.arange(c, dtype=jnp.float32)
    beta = 0.02 * jnp.arange(c, dtype=jnp.float32) - 0.01 * c
    mean = 0.01 * jnp.arange(c, dtype=jnp.float32)
    var = 1.0 + 0.1 * jnp.arange(c, dtype=jnp.float32)
    scale = gamma / jnp.sqrt(var + eps)
    bias = beta - mean * scale
    return scale, bias


def init_params(key, in_c, in_c2, out_c, compress_factor, width, width2):
    reduce_c = int(np.floor(out_c * compress_factor))
    end_c = out_c - reduce_c
    mid_c = min(in_c, width * end_c)
    mid_c2 = min(in_c2, width2 * reduce_c)
    ks = jax.random.split(key, 4)
    s1, b1 = _bn_fold(mid_c)
    s2, b2 = _bn_fold(end_c)
    s3, b3 = _bn_fold(mid_c2)
    s4, b4 = _bn_fold(reduce_c)
    params = dict(
        w1=0.3 * jax.random.normal(ks[0], (in_c, mid_c), jnp.float32),
        w2=0.2 * jax.random.normal(ks[1], (3, 3, mid_c, end_c), jnp.float32),
        w3=0.3 * jax.random.normal(ks[2], (in_c2, mid_c2), jnp.float32),
        w4=0.2 * jax.random.normal(ks[3], (3, 3, mid_c2, reduce_c), jnp.float32),
        s1=s1, b1=b1, s2=s2, b2=b2, s3=s3, b3=b3, s4=s4, b4=b4,
    )
    return params, (reduce_c, end_c, mid_c, mid_c2)


# ----------------------------- pure-JAX reference ----------------------------

def ref_forward(x0, x1, params, down_type="same"):
    def conv1x1(x, w, s, b):
        y = lax.conv_general_dilated(
            x, jnp.transpose(w, (1, 0))[:, :, None, None], (1, 1), "VALID",
            dimension_numbers=("NCHW", "OIHW", "NCHW"))
        return jnp.maximum(y * s[None, :, None, None] + b[None, :, None, None], 0.0)

    def conv3x3(x, w_hwio, s, b, stride):
        y = lax.conv_general_dilated(
            x, jnp.transpose(w_hwio, (3, 2, 0, 1)), (stride, stride),
            ((1, 1), (1, 1)), dimension_numbers=("NCHW", "OIHW", "NCHW"))
        return jnp.maximum(y * s[None, :, None, None] + b[None, :, None, None], 0.0)

    stride = 1 if down_type == "same" else 2
    out = conv3x3(conv1x1(x1, params["w1"], params["s1"], params["b1"]),
                  params["w2"], params["s2"], params["b2"], stride)
    Hout, Wout = out.shape[2], out.shape[3]
    up = conv3x3(conv1x1(x0, params["w3"], params["s3"], params["b3"]),
                 params["w4"], params["s4"], params["b4"], 1)

    def resize(x, hw):
        Rh = _interp_matrix(hw[0], x.shape[2])
        Rw = _interp_matrix(hw[1], x.shape[3])
        return jnp.einsum("ph,nchw,qw->ncpq", Rh, x, Rw)

    return jnp.concatenate([resize(x1, (Hout, Wout)),
                            resize(up, (Hout, Wout)), out], axis=1)


# ----------------------------------- main ------------------------------------

if __name__ == "__main__":
    # ConvUpSampleBlock(in_c=4, in_c2=8, out_c=8, compress_factor=0.5,
    #                   width=2, width2=2)
    in_c, in_c2, out_c = 4, 8, 8
    compress_factor, width, width2 = 0.5, 2, 2

    key = jax.random.PRNGKey(0)
    kp, kx0, kx1 = jax.random.split(key, 3)
    params, (reduce_c, end_c, mid_c, mid_c2) = init_params(
        kp, in_c, in_c2, out_c, compress_factor, width, width2)

    N, H, W = 2, 16, 16        # x[1]: fine-resolution feature (in_c channels)
    H2, W2 = 8, 8              # x[0]: coarse-resolution feature (in_c2 channels)
    x1 = jax.random.normal(kx1, (N, in_c, H, W), jnp.float32)
    x0 = jax.random.normal(kx0, (N, in_c2, H2, W2), jnp.float32)
    c_tot = in_c + reduce_c + end_c

    # ---- down_type='same' (module default), f32 matmul operands -------------
    fwd_same = make_conv_upsample_block(params, x1.shape, x0.shape, "same")
    out = jax.block_until_ready(fwd_same(x0, x1))
    assert out.shape == (N, c_tot, H, W), out.shape
    ref = ref_forward(x0, x1, params, "same")
    np.testing.assert_allclose(np.asarray(out), np.asarray(ref),
                               rtol=1e-4, atol=1e-4)

    # ---- down_type='down' (stride-2 net branch, half-resolution output) -----
    fwd_down = make_conv_upsample_block(params, x1.shape, x0.shape, "down")
    out_d = jax.block_until_ready(fwd_down(x0, x1))
    assert out_d.shape == (N, c_tot, H // 2, W // 2), out_d.shape
    ref_d = ref_forward(x0, x1, params, "down")
    np.testing.assert_allclose(np.asarray(out_d), np.asarray(ref_d),
                               rtol=1e-4, atol=1e-4)

    # ---- bf16 matmul-operand path (v6e/v7x MXU), looser tolerance ------------
    fwd_bf16 = make_conv_upsample_block(params, x1.shape, x0.shape, "same",
                                        matmul_dtype=jnp.bfloat16)
    out_bf = jax.block_until_ready(fwd_bf16(x0, x1))
    np.testing.assert_allclose(np.asarray(out_bf), np.asarray(ref),
                               rtol=5e-2, atol=5e-2)

    print("KERNEL_OK")
</pallas_src>

<mosaic_0001>
module attributes {stable_mosaic.version = 11 : i64} {
  func.func @_fused_block_kernel(%arg0: i32, %arg1: memref<1x4x256xf32, #tpu.memory_space<vmem>>, %arg2: memref<1x8x128xf32, #tpu.memory_space<vmem>>, %arg3: memref<8x4xf32, #tpu.memory_space<vmem>>, %arg4: memref<8x1xf32, #tpu.memory_space<vmem>>, %arg5: memref<4x72xf32, #tpu.memory_space<vmem>>, %arg6: memref<4x1xf32, #tpu.memory_space<vmem>>, %arg7: memref<9x1x256xf32, #tpu.memory_space<vmem>>, %arg8: memref<8x8xf32, #tpu.memory_space<vmem>>, %arg9: memref<8x1xf32, #tpu.memory_space<vmem>>, %arg10: memref<4x72xf32, #tpu.memory_space<vmem>>, %arg11: memref<4x1xf32, #tpu.memory_space<vmem>>, %arg12: memref<9x1x128xf32, #tpu.memory_space<vmem>>, %arg13: memref<128x256xf32, #tpu.memory_space<vmem>>, %arg14: memref<1x12x256xf32, #tpu.memory_space<vmem>>) attributes {dimension_semantics = [#tpu.dimension_semantics<parallel>], iteration_bounds = array<i64: 2>, scalar_prefetch = 0 : i64, scratch_operands = 0 : i64, tpu.core_type = #tpu.core_type<tc>, window_params = [{transform_indices = @transform_0, window_bounds = array<i64: 1, 4, 256>}, {transform_indices = @transform_1, window_bounds = array<i64: 1, 8, 128>}, {pipeline_mode = #tpu.pipeline_mode<synchronous>, transform_indices = @transform_2, window_bounds = array<i64: 8, 4>}, {pipeline_mode = #tpu.pipeline_mode<synchronous>, transform_indices = @transform_3, window_bounds = array<i64: 8, 1>}, {pipeline_mode = #tpu.pipeline_mode<synchronous>, transform_indices = @transform_4, window_bounds = array<i64: 4, 72>}, {pipeline_mode = #tpu.pipeline_mode<synchronous>, transform_indices = @transform_5, window_bounds = array<i64: 4, 1>}, {pipeline_mode = #tpu.pipeline_mode<synchronous>, transform_indices = @transform_6, window_bounds = array<i64: 9, 1, 256>}, {pipeline_mode = #tpu.pipeline_mode<synchronous>, transform_indices = @transform_7, window_bounds = array<i64: 8, 8>}, {pipeline_mode = #tpu.pipeline_mode<synchronous>, transform_indices = @transform_8, window_bounds = array<i64: 8, 1>}, {pipeline_mode = #tpu.pipeline_mode<synchronous>, transform_indices = @transform_9, window_bounds = array<i64: 4, 72>}, {pipeline_mode = #tpu.pipeline_mode<synchronous>, transform_indices = @transform_10, window_bounds = array<i64: 4, 1>}, {pipeline_mode = #tpu.pipeline_mode<synchronous>, transform_indices = @transform_11, window_bounds = array<i64: 9, 1, 128>}, {pipeline_mode = #tpu.pipeline_mode<synchronous>, transform_indices = @transform_12, window_bounds = array<i64: 128, 256>}, {transform_indices = @transform_13, window_bounds = array<i64: 1, 12, 256>}]} {
    %c0 = arith.constant 0 : index
    %c0_0 = arith.constant 0 : index
    %c0_1 = arith.constant 0 : index
    %0 = vector.load %arg1[%c0, %c0_0, %c0_1] : memref<1x4x256xf32, #tpu.memory_space<vmem>>, vector<1x4x256xf32>
    %1 = vector.shape_cast %0 : vector<1x4x256xf32> to vector<4x256xf32>
    %c0_2 = arith.constant 0 : index
    %c0_3 = arith.constant 0 : index
    %c0_4 = arith.constant 0 : index
    %2 = vector.load %arg2[%c0_2, %c0_3, %c0_4] : memref<1x8x128xf32, #tpu.memory_space<vmem>>, vector<1x8x128xf32>
    %3 = vector.shape_cast %2 : vector<1x8x128xf32> to vector<8x128xf32>
    %c0_5 = arith.constant 0 : index
    %c0_6 = arith.constant 0 : index
    %4 = vector.load %arg3[%c0_5, %c0_6] : memref<8x4xf32, #tpu.memory_space<vmem>>, vector<8x4xf32>
    %cst = arith.constant dense<0.000000e+00> : vector<8x256xf32>
    %5 = tpu.matmul %4, %1, %cst {dimension_numbers = #tpu.dot_dimension_numbers<[1], [0], [0], [1], [0, 0, 1, 1], [], []>} : vector<8x4xf32>, vector<4x256xf32>, vector<8x256xf32> -> vector<8x256xf32>
    %c0_7 = arith.constant 0 : index
    %c0_8 = arith.constant 0 : index
    %6 = vector.load %arg4[%c0_7, %c0_8] : memref<8x1xf32, #tpu.memory_space<vmem>>, vector<8x1xf32>
    %7 = vector.broadcast %6 : vector<8x1xf32> to vector<8x256xf32>
    %8 = arith.addf %5, %7 : vector<8x256xf32>
    %cst_9 = arith.constant 0.000000e+00 : f32
    %9 = vector.broadcast %cst_9 : f32 to vector<8x256xf32>
    %10 = arith.maximumf %8, %9 : vector<8x256xf32>
    %c17_i32 = arith.constant 17 : i32
    %11 = tpu.dynamic_rotate %10 by %c17_i32 dim 1 : vector<8x256xf32>, i32 -> vector<8x256xf32>
    %c0_10 = arith.constant 0 : index
    %c0_11 = arith.constant 0 : index
    %c0_12 = arith.constant 0 : index
    %12 = vector.load %arg7[%c0_10, %c0_11, %c0_12] : memref<9x1x256xf32, #tpu.memory_space<vmem>>, vector<1x1x256xf32>
    %13 = vector.shape_cast %12 : vector<1x1x256xf32> to vector<1x256xf32>
    %14 = vector.broadcast %13 : vector<1x256xf32> to vector<8x256xf32>
    %15 = arith.mulf %11, %14 : vector<8x256xf32>
    %c16_i32 = arith.constant 16 : i32
    %16 = tpu.dynamic_rotate %10 by %c16_i32 dim 1 : vector<8x256xf32>, i32 -> vector<8x256xf32>
    %c1 = arith.constant 1 : index
    %c0_13 = arith.constant 0 : index
    %c0_14 = arith.constant 0 : index
    %17 = vector.load %arg7[%c1, %c0_13, %c0_14] : memref<9x1x256xf32, #tpu.memory_space<vmem>>, vector<1x1x256xf32>
    %18 = vector.shape_cast %17 : vector<1x1x256xf32> to vector<1x256xf32>
    %19 = vector.broadcast %18 : vector<1x256xf32> to vector<8x256xf32>
    %20 = arith.mulf %16, %19 : vector<8x256xf32>
    %c15_i32 = arith.constant 15 : i32
    %21 = tpu.dynamic_rotate %10 by %c15_i32 dim 1 : vector<8x256xf32>, i32 -> vector<8x256xf32>
    %c2 = arith.constant 2 : index
    %c0_15 = arith.constant 0 : index
    %c0_16 = arith.constant 0 : index
    %22 = vector.load %arg7[%c2, %c0_15, %c0_16] : memref<9x1x256xf32, #tpu.memory_space<vmem>>, vector<1x1x256xf32>
    %23 = vector.shape_cast %22 : vector<1x1x256xf32> to vector<1x256xf32>
    %24 = vector.broadcast %23 : vector<1x256xf32> to vector<8x256xf32>
    %25 = arith.mulf %21, %24 : vector<8x256xf32>
    %c1_i32 = arith.constant 1 : i32
    %26 = tpu.dynamic_rotate %10 by %c1_i32 dim 1 : vector<8x256xf32>, i32 -> vector<8x256xf32>
    %c3 = arith.constant 3 : index
    %c0_17 = arith.constant 0 : index
    %c0_18 = arith.constant 0 : index
    %27 = vector.load %arg7[%c3, %c0_17, %c0_18] : memref<9x1x256xf32, #tpu.memory_space<vmem>>, vector<1x1x256xf32>
    %28 = vector.shape_cast %27 : vector<1x1x256xf32> to vector<1x256xf32>
    %29 = vector.broadcast %28 : vector<1x256xf32> to vector<8x256xf32>
    %30 = arith.mulf %26, %29 : vector<8x256xf32>
    %c4 = arith.constant 4 : index
    %c0_19 = arith.constant 0 : index
    %c0_20 = arith.constant 0 : index
    %31 = vector.load %arg7[%c4, %c0_19, %c0_20] : memref<9x1x256xf32, #tpu.memory_space<vmem>>, vector<1x1x256xf32>
    %32 = vector.shape_cast %31 : vector<1x1x256xf32> to vector<1x256xf32>
    %33 = vector.broadcast %32 : vector<1x256xf32> to vector<8x256xf32>
    %34 = arith.mulf %10, %33 : vector<8x256xf32>
    %c255_i32 = arith.constant 255 : i32
    %35 = tpu.dynamic_rotate %10 by %c255_i32 dim 1 : vector<8x256xf32>, i32 -> vector<8x256xf32>
    %c5 = arith.constant 5 : index
    %c0_21 = arith.constant 0 : index
    %c0_22 = arith.constant 0 : index
    %36 = vector.load %arg7[%c5, %c0_21, %c0_22] : memref<9x1x256xf32, #tpu.memory_space<vmem>>, vector<1x1x256xf32>
    %37 = vector.shape_cast %36 : vector<1x1x256xf32> to vector<1x256xf32>
    %38 = vector.broadcast %37 : vector<1x256xf32> to vector<8x256xf32>
    %39 = arith.mulf %35, %38 : vector<8x256xf32>
    %c241_i32 = arith.constant 241 : i32
    %40 = tpu.dynamic_rotate %10 by %c241_i32 dim 1 : vector<8x256xf32>, i32 -> vector<8x256xf32>
    %c6 = arith.constant 6 : index
    %c0_23 = arith.constant 0 : index
    %c0_24 = arith.constant 0 : index
    %41 = vector.load %arg7[%c6, %c0_23, %c0_24] : memref<9x1x256xf32, #tpu.memory_space<vmem>>, vector<1x1x256xf32>
    %42 = vector.shape_cast %41 : vector<1x1x256xf32> to vector<1x256xf32>
    %43 = vector.broadcast %42 : vector<1x256xf32> to vector<8x256xf32>
    %44 = arith.mulf %40, %43 : vector<8x256xf32>
    %c240_i32 = arith.constant 240 : i32
    %45 = tpu.dynamic_rotate %10 by %c240_i32 dim 1 : vector<8x256xf32>, i32 -> vector<8x256xf32>
    %c7 = arith.constant 7 : index
    %c0_25 = arith.constant 0 : index
    %c0_26 = arith.constant 0 : index
    %46 = vector.load %arg7[%c7, %c0_25, %c0_26] : memref<9x1x256xf32, #tpu.memory_space<vmem>>, vector<1x1x256xf32>
    %47 = vector.shape_cast %46 : vector<1x1x256xf32> to vector<1x256xf32>
    %48 = vector.broadcast %47 : vector<1x256xf32> to vector<8x256xf32>
    %49 = arith.mulf %45, %48 : vector<8x256xf32>
    %c239_i32 = arith.constant 239 : i32
    %50 = tpu.dynamic_rotate %10 by %c239_i32 dim 1 : vector<8x256xf32>, i32 -> vector<8x256xf32>
    %c8 = arith.constant 8 : index
    %c0_27 = arith.constant 0 : index
    %c0_28 = arith.constant 0 : index
    %51 = vector.load %arg7[%c8, %c0_27, %c0_28] : memref<9x1x256xf32, #tpu.memory_space<vmem>>, vector<1x1x256xf32>
    %52 = vector.shape_cast %51 : vector<1x1x256xf32> to vector<1x256xf32>
    %53 = vector.broadcast %52 : vector<1x256xf32> to vector<8x256xf32>
    %54 = arith.mulf %50, %53 : vector<8x256xf32>
    %55 = tpu.concatenate %15, %20, %25, %30, %34, %39, %44, %49, %54 in 0 : vector<8x256xf32>, vector<8x256xf32>, vector<8x256xf32>, vector<8x256xf32>, vector<8x256xf32>, vector<8x256xf32>, vector<8x256xf32>, vector<8x256xf32>, vector<8x256xf32> -> vector<72x256xf32>
    %c0_29 = arith.constant 0 : index
    %c0_30 = arith.constant 0 : index
    %56 = vector.load %arg5[%c0_29, %c0_30] : memref<4x72xf32, #tpu.memory_space<vmem>>, vector<4x72xf32>
    %cst_31 = arith.constant dense<0.000000e+00> : vector<4x256xf32>
    %57 = tpu.matmul %56, %55, %cst_31 {dimension_numbers = #tpu.dot_dimension_numbers<[1], [0], [0], [1], [0, 0, 1, 1], [], []>} : vector<4x72xf32>, vector<72x256xf32>, vector<4x256xf32> -> vector<4x256xf32>
    %c0_32 = arith.constant 0 : index
    %c0_33 = arith.constant 0 : index
    %58 = vector.load %arg6[%c0_32, %c0_33] : memref<4x1xf32, #tpu.memory_space<vmem>>, vector<4x1xf32>
    %59 = vector.broadcast %58 : vector<4x1xf32> to vector<4x256xf32>
    %60 = arith.addf %57, %59 : vector<4x256xf32>
    %cst_34 = arith.constant 0.000000e+00 : f32
    %61 = vector.broadcast %cst_34 : f32 to vector<4x256xf32>
    %62 = arith.maximumf %60, %61 : vector<4x256xf32>
    %c0_35 = arith.constant 0 : index
    %c0_36 = arith.constant 0 : index
    %63 = vector.load %arg8[%c0_35, %c0_36] : memref<8x8xf32, #tpu.memory_space<vmem>>, vector<8x8xf32>
    %cst_37 = arith.constant dense<0.000000e+00> : vector<8x128xf32>
    %64 = tpu.matmul %63, %3, %cst_37 {dimension_numbers = #tpu.dot_dimension_numbers<[1], [0], [0], [1], [0, 0, 1, 1], [], []>} : vector<8x8xf32>, vector<8x128xf32>, vector<8x128xf32> -> vector<8x128xf32>
    %c0_38 = arith.constant 0 : index
    %c0_39 = arith.constant 0 : index
    %65 = vector.load %arg9[%c0_38, %c0_39] : memref<8x1xf32, #tpu.memory_space<vmem>>, vector<8x1xf32>
    %66 = vector.broadcast %65 : vector<8x1xf32> to vector<8x128xf32>
    %67 = arith.addf %64, %66 : vector<8x128xf32>
    %cst_40 = arith.constant 0.000000e+00 : f32
    %68 = vector.broadcast %cst_40 : f32 to vector<8x128xf32>
    %69 = arith.maximumf %67, %68 : vector<8x128xf32>
    %c9_i32 = arith.constant 9 : i32
    %70 = tpu.dynamic_rotate %69 by %c9_i32 dim 1 : vector<8x128xf32>, i32 -> vector<8x128xf32>
    %c0_41 = arith.constant 0 : index
    %c0_42 = arith.constant 0 : index
    %c0_43 = arith.constant 0 : index
    %71 = vector.load %arg12[%c0_41, %c0_42, %c0_43] : memref<9x1x128xf32, #tpu.memory_space<vmem>>, vector<1x1x128xf32>
    %72 = vector.shape_cast %71 : vector<1x1x128xf32> to vector<1x128xf32>
    %73 = vector.broadcast %72 : vector<1x128xf32> to vector<8x128xf32>
    %74 = arith.mulf %70, %73 : vector<8x128xf32>
    %c8_i32 = arith.constant 8 : i32
    %75 = tpu.dynamic_rotate %69 by %c8_i32 dim 1 : vector<8x128xf32>, i32 -> vector<8x128xf32>
    %c1_44 = arith.constant 1 : index
    %c0_45 = arith.constant 0 : index
    %c0_46 = arith.constant 0 : index
    %76 = vector.load %arg12[%c1_44, %c0_45, %c0_46] : memref<9x1x128xf32, #tpu.memory_space<vmem>>, vector<1x1x128xf32>
    %77 = vector.shape_cast %76 : vector<1x1x128xf32> to vector<1x128xf32>
    %78 = vector.broadcast %77 : vector<1x128xf32> to vector<8x128xf32>
    %79 = arith.mulf %75, %78 : vector<8x128xf32>
    %c7_i32 = arith.constant 7 : i32
    %80 = tpu.dynamic_rotate %69 by %c7_i32 dim 1 : vector<8x128xf32>, i32 -> vector<8x128xf32>
    %c2_47 = arith.constant 2 : index
    %c0_48 = arith.constant 0 : index
    %c0_49 = arith.constant 0 : index
    %81 = vector.load %arg12[%c2_47, %c0_48, %c0_49] : memref<9x1x128xf32, #tpu.memory_space<vmem>>, vector<1x1x128xf32>
    %82 = vector.shape_cast %81 : vector<1x1x128xf32> to vector<1x128xf32>
    %83 = vector.broadcast %82 : vector<1x128xf32> to vector<8x128xf32>
    %84 = arith.mulf %80, %83 : vector<8x128xf32>
    %c1_i32_50 = arith.constant 1 : i32
    %85 = tpu.dynamic_rotate %69 by %c1_i32_50 dim 1 : vector<8x128xf32>, i32 -> vector<8x128xf32>
    %c3_51 = arith.constant 3 : index
    %c0_52 = arith.constant 0 : index
    %c0_53 = arith.constant 0 : index
    %86 = vector.load %arg12[%c3_51, %c0_52, %c0_53] : memref<9x1x128xf32, #tpu.memory_space<vmem>>, vector<1x1x128xf32>
    %87 = vector.shape_cast %86 : vector<1x1x128xf32> to vector<1x128xf32>
    %88 = vector.broadcast %87 : vector<1x128xf32> to vector<8x128xf32>
    %89 = arith.mulf %85, %88 : vector<8x128xf32>
    %c4_54 = arith.constant 4 : index
    %c0_55 = arith.constant 0 : index
    %c0_56 = arith.constant 0 : index
    %90 = vector.load %arg12[%c4_54, %c0_55, %c0_56] : memref<9x1x128xf32, #tpu.memory_space<vmem>>, vector<1x1x128xf32>
    %91 = vector.shape_cast %90 : vector<1x1x128xf32> to vector<1x128xf32>
    %92 = vector.broadcast %91 : vector<1x128xf32> to vector<8x128xf32>
    %93 = arith.mulf %69, %92 : vector<8x128xf32>
    %c127_i32 = arith.constant 127 : i32
    %94 = tpu.dynamic_rotate %69 by %c127_i32 dim 1 : vector<8x128xf32>, i32 -> vector<8x128xf32>
    %c5_57 = arith.constant 5 : index
    %c0_58 = arith.constant 0 : index
    %c0_59 = arith.constant 0 : index
    %95 = vector.load %arg12[%c5_57, %c0_58, %c0_59] : memref<9x1x128xf32, #tpu.memory_space<vmem>>, vector<1x1x128xf32>
    %96 = vector.shape_cast %95 : vector<1x1x128xf32> to vector<1x128xf32>
    %97 = vector.broadcast %96 : vector<1x128xf32> to vector<8x128xf32>
    %98 = arith.mulf %94, %97 : vector<8x128xf32>
    %c121_i32 = arith.constant 121 : i32
    %99 = tpu.dynamic_rotate %69 by %c121_i32 dim 1 : vector<8x128xf32>, i32 -> vector<8x128xf32>
    %c6_60 = arith.constant 6 : index
    %c0_61 = arith.constant 0 : index
    %c0_62 = arith.constant 0 : index
    %100 = vector.load %arg12[%c6_60, %c0_61, %c0_62] : memref<9x1x128xf32, #tpu.memory_space<vmem>>, vector<1x1x128xf32>
    %101 = vector.shape_cast %100 : vector<1x1x128xf32> to vector<1x128xf32>
    %102 = vector.broadcast %101 : vector<1x128xf32> to vector<8x128xf32>
    %103 = arith.mulf %99, %102 : vector<8x128xf32>
    %c120_i32 = arith.constant 120 : i32
    %104 = tpu.dynamic_rotate %69 by %c120_i32 dim 1 : vector<8x128xf32>, i32 -> vector<8x128xf32>
    %c7_63 = arith.constant 7 : index
    %c0_64 = arith.constant 0 : index
    %c0_65 = arith.constant 0 : index
    %105 = vector.load %arg12[%c7_63, %c0_64, %c0_65] : memref<9x1x128xf32, #tpu.memory_space<vmem>>, vector<1x1x128xf32>
    %106 = vector.shape_cast %105 : vector<1x1x128xf32> to vector<1x128xf32>
    %107 = vector.broadcast %106 : vector<1x128xf32> to vector<8x128xf32>
    %108 = arith.mulf %104, %107 : vector<8x128xf32>
    %c119_i32 = arith.constant 119 : i32
    %109 = tpu.dynamic_rotate %69 by %c119_i32 dim 1 : vector<8x128xf32>, i32 -> vector<8x128xf32>
    %c8_66 = arith.constant 8 : index
    %c0_67 = arith.constant 0 : index
    %c0_68 = arith.constant 0 : index
    %110 = vector.load %arg12[%c8_66, %c0_67, %c0_68] : memref<9x1x128xf32, #tpu.memory_space<vmem>>, vector<1x1x128xf32>
    %111 = vector.shape_cast %110 : vector<1x1x128xf32> to vector<1x128xf32>
    %112 = vector.broadcast %111 : vector<1x128xf32> to vector<8x128xf32>
    %113 = arith.mulf %109, %112 : vector<8x128xf32>
    %114 = tpu.concatenate %74, %79, %84, %89, %93, %98, %103, %108, %113 in 0 : vector<8x128xf32>, vector<8x128xf32>, vector<8x128xf32>, vector<8x128xf32>, vector<8x128xf32>, vector<8x128xf32>, vector<8x128xf32>, vector<8x128xf32>, vector<8x128xf32> -> vector<72x128xf32>
    %c0_69 = arith.constant 0 : index
    %c0_70 = arith.constant 0 : index
    %115 = vector.load %arg10[%c0_69, %c0_70] : memref<4x72xf32, #tpu.memory_space<vmem>>, vector<4x72xf32>
    %cst_71 = arith.constant dense<0.000000e+00> : vector<4x128xf32>
    %116 = tpu.matmul %115, %114, %cst_71 {dimension_numbers = #tpu.dot_dimension_numbers<[1], [0], [0], [1], [0, 0, 1, 1], [], []>} : vector<4x72xf32>, vector<72x128xf32>, vector<4x128xf32> -> vector<4x128xf32>
    %c0_72 = arith.constant 0 : index
    %c0_73 = arith.constant 0 : index
    %117 = vector.load %arg11[%c0_72, %c0_73] : memref<4x1xf32, #tpu.memory_space<vmem>>, vector<4x1xf32>
    %118 = vector.broadcast %117 : vector<4x1xf32> to vector<4x128xf32>
    %119 = arith.addf %116, %118 : vector<4x128xf32>
    %cst_74 = arith.constant 0.000000e+00 : f32
    %120 = vector.broadcast %cst_74 : f32 to vector<4x128xf32>
    %121 = arith.maximumf %119, %120 : vector<4x128xf32>
    %c0_75 = arith.constant 0 : index
    %c0_76 = arith.constant 0 : index
    %122 = vector.load %arg13[%c0_75, %c0_76] : memref<128x256xf32, #tpu.memory_space<vmem>>, vector<128x256xf32>
    %cst_77 = arith.constant dense<0.000000e+00> : vector<4x256xf32>
    %123 = tpu.matmul %121, %122, %cst_77 {dimension_numbers = #tpu.dot_dimension_numbers<[1], [0], [0], [1], [0, 0, 1, 1], [], []>} : vector<4x128xf32>, vector<128x256xf32>, vector<4x256xf32> -> vector<4x256xf32>
    %124 = tpu.concatenate %1, %123, %62 in 0 : vector<4x256xf32>, vector<4x256xf32>, vector<4x256xf32> -> vector<12x256xf32>
    %c0_78 = arith.constant 0 : index
    %c0_79 = arith.constant 0 : index
    %c0_80 = arith.constant 0 : index
    %125 = vector.load %arg14[%c0_78, %c0_79, %c0_80] : memref<1x12x256xf32, #tpu.memory_space<vmem>>, vector<1x12x256xf32>
    %126 = vector.shape_cast %125 : vector<1x12x256xf32> to vector<12x256xf32>
    %127 = vector.shape_cast %124 : vector<12x256xf32> to vector<1x12x256xf32>
    tpu.vector_store %arg14[%c0_78, %c0_79, %c0_80], %127 {strides = array<i32>} : memref<1x12x256xf32, #tpu.memory_space<vmem>>, vector<1x12x256xf32>,
    return
  }
  func.func @transform_0(%arg0: i32) -> (i32, i32, i32) {
    %c0_i32 = arith.constant 0 : i32
    %c0_i32_0 = arith.constant 0 : i32
    %c0_i32_1 = arith.constant 0 : i32
    return %arg0, %c0_i32, %c0_i32_0 : i32, i32, i32
  }
  func.func @transform_1(%arg0: i32) -> (i32, i32, i32) {
    %c0_i32 = arith.constant 0 : i32
    %c0_i32_0 = arith.constant 0 : i32
    %c0_i32_1 = arith.constant 0 : i32
    return %arg0, %c0_i32, %c0_i32_0 : i32, i32, i32
  }
  func.func @transform_2(%arg0: i32) -> (i32, i32) {
    %c0_i32 = arith.constant 0 : i32
    %c0_i32_0 = arith.constant 0 : i32
    %c0_i32_1 = arith.constant 0 : i32
    return %c0_i32, %c0_i32_0 : i32, i32
  }
  func.func @transform_3(%arg0: i32) -> (i32, i32) {
    %c0_i32 = arith.constant 0 : i32
    %c0_i32_0 = arith.constant 0 : i32
    %c0_i32_1 = arith.constant 0 : i32
    return %c0_i32, %c0_i32_0 : i32, i32
  }
  func.func @transform_4(%arg0: i32) -> (i32, i32) {
    %c0_i32 = arith.constant 0 : i32
    %c0_i32_0 = arith.constant 0 : i32
    %c0_i32_1 = arith.constant 0 : i32
    return %c0_i32, %c0_i32_0 : i32, i32
  }
  func.func @transform_5(%arg0: i32) -> (i32, i32) {
    %c0_i32 = arith.constant 0 : i32
    %c0_i32_0 = arith.constant 0 : i32
    %c0_i32_1 = arith.constant 0 : i32
    return %c0_i32, %c0_i32_0 : i32, i32
  }
  func.func @transform_6(%arg0: i32) -> (i32, i32, i32) {
    %c0_i32 = arith.constant 0 : i32
    %c0_i32_0 = arith.constant 0 : i32
    %c0_i32_1 = arith.constant 0 : i32
    %c0_i32_2 = arith.constant 0 : i32
    return %c0_i32, %c0_i32_0, %c0_i32_1 : i32, i32, i32
  }
  func.func @transform_7(%arg0: i32) -> (i32, i32) {
    %c0_i32 = arith.constant 0 : i32
    %c0_i32_0 = arith.constant 0 : i32
    %c0_i32_1 = arith.constant 0 : i32
    return %c0_i32, %c0_i32_0 : i32, i32
  }
  func.func @transform_8(%arg0: i32) -> (i32, i32) {
    %c0_i32 = arith.constant 0 : i32
    %c0_i32_0 = arith.constant 0 : i32
    %c0_i32_1 = arith.constant 0 : i32
    return %c0_i32, %c0_i32_0 : i32, i32
  }
  func.func @transform_9(%arg0: i32) -> (i32, i32) {
    %c0_i32 = arith.constant 0 : i32
    %c0_i32_0 = arith.constant 0 : i32
    %c0_i32_1 = arith.constant 0 : i32
    return %c0_i32, %c0_i32_0 : i32, i32
  }
  func.func @transform_10(%arg0: i32) -> (i32, i32) {
    %c0_i32 = arith.constant 0 : i32
    %c0_i32_0 = arith.constant 0 : i32
    %c0_i32_1 = arith.constant 0 : i32
    return %c0_i32, %c0_i32_0 : i32, i32
  }
  func.func @transform_11(%arg0: i32) -> (i32, i32, i32) {
    %c0_i32 = arith.constant 0 : i32
    %c0_i32_0 = arith.constant 0 : i32
    %c0_i32_1 = arith.constant 0 : i32
    %c0_i32_2 = arith.constant 0 : i32
    return %c0_i32, %c0_i32_0, %c0_i32_1 : i32, i32, i32
  }
  func.func @transform_12(%arg0: i32) -> (i32, i32) {
    %c0_i32 = arith.constant 0 : i32
    %c0_i32_0 = arith.constant 0 : i32
    %c0_i32_1 = arith.constant 0 : i32
    return %c0_i32, %c0_i32_0 : i32, i32
  }
  func.func @transform_13(%arg0: i32) -> (i32, i32, i32) {
    %c0_i32 = arith.constant 0 : i32
    %c0_i32_0 = arith.constant 0 : i32
    %c0_i32_1 = arith.constant 0 : i32
    return %arg0, %c0_i32, %c0_i32_0 : i32, i32, i32
  }
}

</mosaic_0001>

<bundles_post_ra>
// kernel: forward.1
= control target key start
LH: loop header
LB: loop body
LE: loop exit
PB: predicated region body
PF: predicated region fallthrough
CT: control target
= control target key end

     0   :  { %18 = vsyncpa [#allocation3], 0  ;;  %s1247_s25 = smov 0   ;;  %s1509_s0 = inlined_call_operand.vmem [shape: f32[2,4,256], index: 0, kind: input, shape index: {}]   ;;  %s1510_s1 = inlined_call_operand.vmem [shape: f32[2,8,128], index: 1, kind: input, shape index: {}]   ;;  %s1511_s2 = inlined_call_operand.vmem [shape: f32[8,4], index: 2, kind: input, shape index: {}]   ;;  %s1512_s3 = inlined_call_operand.vmem [shape: f32[8,1], index: 3, kind: input, shape index: {}]   ;;  %s1513_s4 = inlined_call_operand.vmem [shape: f32[4,72], index: 4, kind: input, shape index: {}]   ;;  %s1514_s5 = inlined_call_operand.vmem [shape: f32[4,1], index: 5, kind: input, shape index: {}, may-alias: {5,10}]   ;;  %s1515_s6 = inlined_call_operand.vmem [shape: f32[9,1,256], index: 6, kind: input, shape index: {}]   ;;  %s1516_s7 = inlined_call_operand.vmem [shape: f32[8,8], index: 7, kind: input, shape index: {}]   ;;  %s1517_s8 = inlined_call_operand.vmem [shape: f32[8,1], index: 8, kind: input, shape index: {}]   ;;  %s1518_s9 = inlined_call_operand.vmem [shape: f32[4,72], index: 9, kind: input, shape index: {}]   ;;  %s1519_s10 = inlined_call_operand.vmem [shape: f32[4,1], index: 10, kind: input, shape index: {}, may-alias: {5,10}]   ;;  %s1520_s11 = inlined_call_operand.vmem [shape: f32[9,1,128], index: 11, kind: input, shape index: {}]   ;;  %s1521_s12 = inlined_call_operand.hbm [shape: f32[128,256], index: 12, kind: input, shape index: {}]   ;;  %s1522_s13 = inlined_call_operand.vmem [shape: f32[2,12,256], index: 13, kind: output, shape index: {}]  }
   0x1 LB: > { %s379_s28 = sshll.u32 %s1521_s12, 4  ;;  %s1030_s29 = sadd.s32 4294967295, %s1157_s25   ;;  %s1157_s25 = sphi %s1247_s25, %s24_s25   ;;  %s380_s28 = int_to_ptr.hbm [resolvable:$true] %s379_s28 }
   0x2   : > { %p1032_p0 = scmp.ge.s32.totalorder %s1157_s25, 1  ;;  %p338_p1 = scmp.lt.s32.totalorder %s1157_s25, 3 }
   0x3   : > { %p1078_p2 = scmp.eq.s32.totalorder %s1030_s29, 0  ;;  %s1159_s30 = smov [#allocation2]  }
   0x4   : > { %p339_p3 = pnand %p1032_p0, %p338_p1  ;;  %s381_s14 = sshll.u32 %s1159_s30, 4  ;;  %s382_s14 = int_to_ptr.vmem [resolvable:$true] %s381_s14 }
   0x5   : > { %s1160_s15 = smov 256   ;;  %s1161_s16 = smov 16  }
   0x6   : > { %p1074_p4 = pneg %p339_p3  ;;  %412 = sbr.rel (%p339_p3) target bundleno = 601 (0x259), region = 72 }
   0x8   : > { %p1075_p5 = pnand %p1078_p2, %p1074_p4 }
   0xa   : > { %1077 = dma.hbm_to_vmem [thread:$0]  (!%p1075_p5), %s380_s28, 4096, %s382_s14, [#allocation3], %s1160_s15, %s1160_s15, %s1161_s16  }
   0xb   : > { %1152 = dma.done.wait (%p1078_p2), [#allocation3], 4096  }
   0xc   : > { %1154 = vsyncadd (%p1078_p2), [#allocation3], 4294963200  ;;  %p461_p6 = scmp.lt.s32.totalorder %s1030_s29, 1  ;;  %v1162_v0 = vmov 0   ;;  %vm737_vm0 = vcmask 64512   ;;  %v730_v3 = vld [vmem:[%s1516_s7] sm:$0xff]  ;;  %v543_v51 = vlaneseq }
   0xd   : > { %1106 = vset.pattern.permute.xlu0 %v1162_v0  ;;  %1107 = vset.pattern.permute.xlu2 %v1162_v0  ;;  %v731_v4 = vld [vmem:[%s1517_s8] sm:$0xff]  ;;  %vm492_vm1 = vcmask 1043456   ;;  %vm488_vm2 = vcmask 31744   ;;  %s1163_s15 = smov 127   ;;  %s1164_s16 = smov 120   ;;  %vm684_vm3 = vcmask 588800  }
   0xe   : > { %s1524_s29 = smov (!%p461_p6, %s1030_s29), 1  ;;  %734 = vperm.xlu0 %1106, %v731_v4   ;;  %v477_v6 = vld [vmem:[%s1511_s2] sm:$0xff]  ;;  %s1166_s18 = smov 1   ;;  %v1112_v14 = vld [vmem:[%s1520_s11 + $0x8] ss:$0 sm:$0xff]  ;;  %v1348_v52 = vand.u32 127, %v543_v51 }
   0xf   : > { %s1068_s17 = sshll.u32 %s1524_s29, 3  ;;  %s1167_s19 = smov 121   ;;  %v478_v12 = vld [vmem:[%s1512_s3] sm:$0xff]  ;;  %v1353_v53 = vld [vmem:[%s1515_s6 + $0x10] sm:$0x3]  ;;  %v892_v56 = vld [vmem:[#allocation2 + $0xf0] sm:$0xff] }
  0x10   : > { %s465_s20 = scalar_lea.vmem %s1509_s0, %s1068_s17  ;;  %s469_s23 = scalar_lea.vmem %s1510_s1, %s1068_s17  ;;  %v1111_v15 = vld [vmem:[%s1520_s11 + $0x7] ss:$0 sm:$0xff]  ;;  %v1113_v20 = vld [vmem:[%s1520_s11 + $0x6] ss:$0 sm:$0xff]  ;;  %v1108_v21 = vld [vmem:[%s1520_s11 + $0x5] ss:$0 sm:$0xff] }
  0x11   : > { %v475_v1 = vld [vmem:[%s465_s20] sm:$0xff]  ;;  %s1165_s17 = smov 119   ;;  %s1168_s20 = smov 7   ;;  %vm665_vm4 = vcmp.lt.s32.totalorder %v1348_v52, 111  ;;  %v671_v55 = vperm.slane %v1353_v53, 0  ;;  %v890_v61 = vld [vmem:[#allocation2 + $0xe0] sm:$0xff] }
  0x12   : > { %v476_v2 = vld [vmem:[%s469_s23] sm:$0xff]  ;;  %485 = vst [vmem:[#allocation1] ss:$2 sm:$0xff] %v475_v1  ;;  %s1169_s23 = smov 9   ;;  %s1170_s24 = smov 8   ;;  %v891_v62 = vld [vmem:[#allocation2 + $0xe8] sm:$0xff] }
  0x13   : > { %756 = vmatpush.msra.mxu0 %v476_v2  ;;  %v1115_v26 = vld [vmem:[%s1520_s11 + $0x4] ss:$0 sm:$0xff]  ;;  %v1109_v28 = vld [vmem:[%s1520_s11 + $0x3] ss:$0 sm:$0xff]  ;;  %v1114_v29 = vld [vmem:[%s1520_s11 + $0x2] ss:$0 sm:$0xff] }
  0x14   : > { %1056 = vmatmul.msk.f32.vlgmr.msra.gmra.mxu0 %vm737_vm0, %v730_v3  ;;  %v1116_v32 = vld [vmem:[%s1520_s11 + $0x1] ss:$0 sm:$0xff]  ;;  %v1110_v34 = vld [vmem:[%s1520_s11] ss:$0 sm:$0xff]  ;;  %v888_v0 = vld [vmem:[#allocation2 + $0xd0] sm:$0xff]  ;;  %vm633_vm5 = vcmp.lt.s32.totalorder %v1348_v52, 113 }
  0x15   : > { %v831_v44 = vld [vmem:[%s1518_s9] sm:$0xf]  ;;  %894 = vmatpush.msrb.mxu0 %v892_v56  ;;  %v886_v2 = vld [vmem:[#allocation2 + $0xc0] sm:$0xff]  ;;  %v887_v3 = vld [vmem:[#allocation2 + $0xc8] sm:$0xff]  ;;  %vm649_vm6 = vcmp.lt.s32.totalorder %v1348_v52, 112  ;;  %vm617_vm7 = vcmp.lt.s32.totalorder %v1348_v52, 127 }
  0x16   : > { %v678_v47 = vld [vmem:[%s1514_s5] sm:$0xf]  ;;  %v884_v4 = vld [vmem:[#allocation2 + $0xb0] sm:$0xff]  ;;  %vm576_vm8 = vcmp.lt.s32.totalorder %v1348_v52, 15  ;;  %vm592_vm9 = vcmp.lt.s32.totalorder %v1348_v52, 1  ;;  %vm560_vm10 = vcmp.lt.s32.totalorder %v1348_v52, 16 }
  0x17   : > { %v832_v48 = vld [vmem:[%s1519_s10] sm:$0xf]  ;;  %895 = vmatpush.msrb.mxu0 %v890_v61  ;;  %vm545_vm11 = vcmp.lt.s32.totalorder %v1348_v52, 17 }
  0x18   : > { %v893_v57 = vld [vmem:[#allocation2 + $0xf8] sm:$0xff] }
  0x19   : > { %v486_v5 = vld.sshfl [vmem:[#allocation1] sm:$0xff pattern:$0x75316420]  ;;  %v487_v7 = vld.sshfl [vmem:[#allocation1 + $0x8] sm:$0xff pattern:$0x75316420]  ;;  %914 = vmatpush.msra.mxu2 %v893_v57  ;;  %896 = vmatpush.msrb.mxu0 %v888_v0 }
  0x1a   : > { %1042 = vmatpush.msk.msra.mxu1 %vm492_vm1, %v486_v5  ;;  %934 = vst [vmem:[#allocation1] ss:$2 sm:$0xff] %v475_v1  ;;  %v889_v1 = vld [vmem:[#allocation2 + $0xd8] sm:$0xff]  ;;  %v862_v0 = vld [vmem:[#allocation2] sm:$0xff] }
  0x1b   : > { %1043 = vmatmul.msk.f32.vlgmr.msra.gmra.mxu1 %vm488_vm2, %v477_v6  ;;  %915 = vmatpush.msra.mxu2 %v891_v62  ;;  %v885_v5 = vld [vmem:[#allocation2 + $0xb8] sm:$0xff] }
  0x1c   : > { %1044 = vmatpush.msk.msrb.mxu1 %vm492_vm1, %v487_v7  ;;  %897 = vmatpush.msrb.mxu0 %v886_v2  ;;  %v865_v56 = vld [vmem:[#allocation2 + $0x18] sm:$0xff] }
  0x1d   : > { %916 = vmatpush.msra.mxu2 %v889_v1  ;;  %v1428_v57 = vld [vmem:[%s1515_s6 + $0x4] sm:$0x3]  ;;  %v863_v1 = vld [vmem:[#allocation2 + $0x8] sm:$0xff]  ;;  %v1436_v2 = vld [vmem:[%s1515_s6 + $0x2] sm:$0x3] }
  0x1e   : > { %898 = vmatpush.msrb.mxu0 %v884_v4 }
  0x1f   : > { %917 = vmatpush.msra.mxu2 %v887_v3 }
  0x21   : > { %918 = vmatpush.msra.mxu2 %v885_v5  ;;  %v582_v5 = vperm.slane %v1428_v57, 0 }
  0x23   : > { %1045 = vmatmul.msk.f32.vlgmr.msrb.gmra.mxu1 %vm488_vm2, %v477_v6 }
  0x80   : > { %v735_v8 = vpop.permute.xlu0 %734 }
  0x91   : > { %v758_v9 = vpop.f32.mrf.mxu0 }
  0x92   : > { %v759_v10 = vadd.f32 %v758_v9, %v735_v8  ;;  %v882_v8 = vld [vmem:[#allocation2 + $0xa0] sm:$0xff]  ;;  %v883_v9 = vld [vmem:[#allocation2 + $0xa8] sm:$0xff] }
  0x93   : > { %899 = vmatpush.msrb.mxu0 %v882_v8  ;;  %919 = vmatpush.msra.mxu2 %v883_v9 }
  0x94   : > { %v761_v11 = vmax.f32 %v759_v10, 0.0 }
  0x96   : > { %799 = vrot.lane.b32.xlu2 %v761_v11, %s1163_s15  ;;  %815 = vrot.lane.b32.xlu1 %v761_v11, %s1164_s16  ;;  %v798_v30 = vmul.f32 %v1115_v26, %v761_v11  ;;  %s1171_s16 = smov 113  }
  0x97   : > { %823 = vrot.lane.b32.xlu0 %v761_v11, %s1165_s17  ;;  %s1172_s17 = smov 112  }
  0x98   : > { %v514_v36 = vpop.f32.mrf.mxu1 }
  0x9e   : > { %785 = vrot.lane.b32.xlu2 %v761_v11, %s1166_s18  ;;  %807 = vrot.lane.b32.xlu1 %v761_v11, %s1167_s19  ;;  %s1173_s19 = smov 111  }
  0x9f   : > { %777 = vrot.lane.b32.xlu0 %v761_v11, %s1168_s20  ;;  %s1174_s20 = smov 15  }
  0xa0   : > { %v534_v43 = vpop.f32.mrf.mxu1 }
  0xa6   : > { %762 = vrot.lane.b32.xlu2 %v761_v11, %s1169_s23  ;;  %769 = vrot.lane.b32.xlu1 %v761_v11, %s1170_s24  ;;  %s1175_s23 = smov 16   ;;  %s1176_s24 = smov 17   ;;  %v880_v11 = vld [vmem:[#allocation2 + $0x90] sm:$0xff] }
  0xa7   : > { %481 = vperm.xlu0 %1106, %v478_v12   ;;  %v881_v12 = vld [vmem:[#allocation2 + $0x98] sm:$0xff]  ;;  %900 = vmatpush.msrb.mxu0 %v880_v11 }
  0xa8   : > { %920 = vmatpush.msra.mxu2 %v881_v12  ;;  %v566_v12 = vperm.slane %v1436_v2, 0 }
  0xf0   : > { %v800_v13 = vpop.permute.xlu2 %799 }
  0xf1   : > { %v806_v27 = vmul.f32 %v1108_v21, %v800_v13  ;;  %v878_v13 = vld [vmem:[#allocation2 + $0x80] sm:$0xff] }
  0xf2   : > { %901 = vmatpush.msrb.mxu0 %v878_v13  ;;  %v1380_v21 = vld [vmem:[%s1515_s6 + $0xe] sm:$0x3]  ;;  %v548_v13 = vld [vmem:[%s1515_s6] sm:$0x3] }
  0xf3   : > { %v655_v26 = vperm.slane %v1380_v21, 0 }
  0xf8   : > { %v786_v22 = vpop.permute.xlu2 %785 }
  0xf9   : > { %v792_v31 = vmul.f32 %v1109_v28, %v786_v22  ;;  %v871_v28 = vld [vmem:[#allocation2 + $0x48] sm:$0xff] }
 0x100   : > { %v763_v38 = vpop.permute.xlu2 %762 }
 0x101   : > { %v768_v42 = vmul.f32 %v1110_v34, %v763_v38 }
 0x108   : > { %v816_v16 = vpop.permute.xlu1 %815 }
 0x109   : > { %v824_v17 = vpop.permute.xlu0 %823  ;;  %v822_v19 = vmul.f32 %v1111_v15, %v816_v16  ;;  %v876_v16 = vld [vmem:[#allocation2 + $0x70] sm:$0xff] }
 0x10a   : > { %v830_v18 = vmul.f32 %v1112_v14, %v824_v17  ;;  %v879_v14 = vld [vmem:[#allocation2 + $0x88] sm:$0xff]  ;;  %v877_v17 = vld [vmem:[#allocation2 + $0x78] sm:$0xff]  ;;  %902 = vmatpush.msrb.mxu0 %v876_v16 }
 0x10b   : > { %921 = vmatpush.msra.mxu2 %v879_v14 }
 0x10c   : > { %848 = vmatpush.msra.mxu1 %v830_v18 }
 0x10d   : > { %922 = vmatpush.msra.mxu2 %v877_v17  ;;  %v550_v17 = vperm.slane %v548_v13, 0 }
 0x10e   : > { %849 = vmatpush.msra.mxu1 %v822_v19  ;;  %v874_v19 = vld [vmem:[#allocation2 + $0x60] sm:$0xff] }
 0x10f   : > { %903 = vmatpush.msrb.mxu0 %v874_v19 }
 0x110   : > { %v808_v23 = vpop.permute.xlu1 %807 }
 0x111   : > { %v814_v24 = vmul.f32 %v1113_v20, %v808_v23  ;;  %v778_v25 = vpop.permute.xlu0 %777  ;;  %v875_v20 = vld [vmem:[#allocation2 + $0x68] sm:$0xff]  ;;  %v872_v23 = vld [vmem:[#allocation2 + $0x50] sm:$0xff] }
 0x112   : > { %v784_v35 = vmul.f32 %v1114_v29, %v778_v25  ;;  %923 = vmatpush.msra.mxu2 %v875_v20  ;;  %v1387_v25 = vld [vmem:[%s1515_s6 + $0xc] sm:$0x3]  ;;  %904 = vmatpush.msrb.mxu0 %v872_v23  ;;  %v1395_v29 = vld [vmem:[%s1515_s6 + $0xa] sm:$0x3]  ;;  %v672_v23 = vperm.slane %v1353_v53, 1 }
 0x113   : > { %850 = vmatpush.msra.mxu1 %v814_v24  ;;  %v873_v24 = vld [vmem:[#allocation2 + $0x58] sm:$0xff]  ;;  %v623_v38 = vperm.slane %v1395_v29, 0 }
 0x114   : > { %924 = vmatpush.msra.mxu2 %v873_v24 }
 0x115   : > { %851 = vmatpush.msra.mxu1 %v806_v27  ;;  %v870_v27 = vld [vmem:[#allocation2 + $0x40] sm:$0xff] }
 0x116   : > { %905 = vmatpush.msrb.mxu0 %v870_v27  ;;  %925 = vmatpush.msra.mxu2 %v871_v28  ;;  %v677_v28 = vld [vmem:[%s1513_s4] sm:$0xf] }
 0x117   : > { %852 = vmatpush.msra.mxu1 %v798_v30 }
 0x118   : > { %v770_v33 = vpop.permute.xlu1 %769 }
 0x119   : > { %v482_v37 = vpop.permute.xlu0 %481  ;;  %853 = vmatpush.msra.mxu1 %v792_v31  ;;  %v776_v40 = vmul.f32 %v1116_v32, %v770_v33  ;;  %v639_v31 = vperm.slane %v1387_v25, 0  ;;  %v868_v32 = vld [vmem:[#allocation2 + $0x30] sm:$0xff]  ;;  %v869_v33 = vld [vmem:[#allocation2 + $0x38] sm:$0xff] }
 0x11a   : > { %v515_v39 = vadd.f32 %v514_v36, %v482_v37  ;;  %v535_v45 = vadd.f32 %v534_v43, %v482_v37  ;;  %v1412_v36 = vld [vmem:[%s1515_s6 + $0x8] sm:$0x3]  ;;  %906 = vmatpush.msrb.mxu0 %v868_v32  ;;  %926 = vmatpush.msra.mxu2 %v869_v33  ;;  %v640_v33 = vperm.slane %v1387_v25, 1 }
 0x11b   : > { %854 = vmatpush.msra.mxu1 %v784_v35  ;;  %v607_v51 = vperm.slane %v1412_v36, 0  ;;  %v608_v25 = vperm.slane %v1412_v36, 1  ;;  %v567_v36 = vperm.slane %v1436_v2, 1 }
 0x11c   : > { %v1310_v41 = vmax.f32 %v515_v39, 0.0  ;;  %v1324_v46 = vmax.f32 %v535_v45, 0.0  ;;  %v1422_v45 = vld [vmem:[%s1515_s6 + $0x6] sm:$0x3] }
 0x11d   : > { %855 = vmatpush.msra.mxu1 %v776_v40  ;;  %v866_v40 = vld [vmem:[#allocation2 + $0x20] sm:$0xff] }
 0x11e   : > { %629 = vrot.lane.b32.xlu2 %v1310_v41, %s1171_s16  ;;  %645 = vrot.lane.b32.xlu0 %v1310_v41, %s1172_s17  ;;  %v611_v4 = vmul.f32 %v607_v51, %v1310_v41 }
 0x11f   : > { %661 = vrot.lane.b32.xlu1 %v1310_v41, %s1173_s19  ;;  %856 = vmatpush.msra.mxu1 %v768_v42  ;;  %v867_v42 = vld [vmem:[#allocation2 + $0x28] sm:$0xff] }
 0x120   : > { %1065 = vmatmul.msk.f32.vlgmr.msra.gmra.mxu1 %vm684_vm3, %v831_v44  ;;  %907 = vmatpush.msrb.mxu0 %v866_v40 }
 0x121   : > { %927 = vmatpush.msra.mxu2 %v867_v42  ;;  %v935_v42 = vld.sshfl [vmem:[#allocation1] sm:$0xff pattern:$0x75316420] }
 0x123   : > { %928 = vmatpush.msra.mxu2 %v865_v56 }
 0x125   : > { %929 = vmatpush.msra.mxu2 %v863_v1 }
 0x126   : > { %572 = vrot.lane.b32.xlu2 %v1310_v41, %s1174_s20  ;;  %588 = vrot.lane.b32.xlu0 %v1310_v41, %s1166_s18 }
 0x127   : > { %613 = vrot.lane.b32.xlu1 %v1310_v41, %s1163_s15 }
 0x12e   : > { %663 = vrot.lane.b32.xlu2 %v1324_v46, %s1173_s19  ;;  %631 = vrot.lane.b32.xlu0 %v1324_v46, %s1171_s16  ;;  %s1069_s19 = sshll.u32 %s1524_s29, 5 }
 0x12f   : > { %556 = vrot.lane.b32.xlu1 %v1310_v41, %s1175_s23  ;;  %s474_s22 = scalar_lea.vmem %s1522_s13, %s1069_s19 }
 0x136   : > { %615 = vrot.lane.b32.xlu2 %v1324_v46, %s1163_s15  ;;  %574 = vrot.lane.b32.xlu0 %v1324_v46, %s1174_s20 }
 0x137   : > { %647 = vrot.lane.b32.xlu1 %v1324_v46, %s1172_s17 }
 0x13e   : > { %558 = vrot.lane.b32.xlu2 %v1324_v46, %s1175_s23  ;;  %539 = vrot.lane.b32.xlu0 %v1310_v41, %s1176_s24 }
 0x13f   : > { %590 = vrot.lane.b32.xlu1 %v1324_v46, %s1166_s18 }
 0x146   : > { %681 = vperm.xlu0 %1106, %v678_v47   ;;  %835 = vperm.xlu2 %1107, %v832_v48  }
 0x147   : > { %541 = vrot.lane.b32.xlu1 %v1324_v46, %s1176_s24 }
 0x178   : > { %v1344_v49 = vpop.permute.xlu2 %629 }
 0x180   : > { %v1346_v50 = vpop.permute.xlu2 %572 }
 0x188   : > { %v1355_v54 = vpop.permute.xlu2 %663 }
 0x190   : > { %v1359_v58 = vpop.permute.xlu0 %645  ;;  %v1367_v6 = vpop.permute.xlu2 %615 }
 0x191   : > { %v1361_v59 = vpop.permute.xlu1 %661 }
 0x192   : > { %v666_v60 = vsel %vm665_vm4, %v1361_v59, %v1355_v54  ;;  %v667_v24 = vsel %vm665_vm4, %v1355_v54, %v1361_v59 }
 0x193   : > { %v675_v63 = vmul.f32 %v671_v55, %v666_v60  ;;  %v864_v55 = vld [vmem:[#allocation2 + $0x10] sm:$0xff]  ;;  %v676_v32 = vmul.f32 %v672_v23, %v667_v24 }
 0x194   : > { %908 = vmatpush.msrb.mxu0 %v864_v55 }
 0x195   : > { %695 = vmatpush.msra.mxu3 %v675_v63  ;;  %v598_v63 = vperm.slane %v1422_v45, 0 }
 0x196   : > { %909 = vmatpush.msrb.mxu0 %v862_v0 }
 0x198   : > { %v1371_v10 = vpop.permute.xlu0 %588  ;;  %v1375_v18 = vpop.permute.xlu2 %558 }
 0x199   : > { %v1369_v7 = vpop.permute.xlu1 %613 }
 0x19a   : > { %v618_v44 = vsel %vm617_vm7, %v1369_v7, %v1367_v6 }
 0x19b   : > { %v627_v62 = vmul.f32 %v623_v38, %v618_v44  ;;  %v551_v38 = vperm.slane %v548_v13, 1 }
 0x19d   : > { %v858_v39 = vpop.f32.mrf.mxu1 }
 0x1a0   : > { %v1382_v22 = vpop.permute.xlu0 %631  ;;  %v836_v43 = vpop.permute.xlu2 %835 }
 0x1a1   : > { %v1373_v15 = vpop.permute.xlu1 %556  ;;  %v634_v34 = vsel %vm633_vm5, %v1344_v49, %v1382_v22  ;;  %v859_v47 = vadd.f32 %v858_v39, %v836_v43  ;;  %v635_v54 = vsel %vm633_vm5, %v1382_v22, %v1344_v49  ;;  %v612_v22 = vmul.f32 %v608_v25, %v1324_v46 }
 0x1a2   : > { %v643_v48 = vmul.f32 %v639_v31, %v634_v34  ;;  %v562_v41 = vsel %vm560_vm10, %v1375_v18, %v1373_v15  ;;  %v656_v31 = vperm.slane %v1380_v21, 1  ;;  %v624_v21 = vperm.slane %v1395_v29, 1 }
 0x1a3   : > { %v861_v60 = vmax.f32 %v859_v47, 0.0  ;;  %v570_v16 = vmul.f32 %v566_v12, %v562_v41  ;;  %v583_v29 = vperm.slane %v1428_v57, 1 }
 0x1a5   : > { %910 = vmatmul.f32.vlgmr.msrb.gmra.mxu0 %v861_v60  ;;  %930 = vmatmul.f32.vlgmr.msra.gmra.mxu2 %v861_v60 }
 0x1a8   : > { %v575_v61 = vpop.permute.xlu0 %574 }
 0x1a9   : > { %v1398_v30 = vpop.permute.xlu1 %647  ;;  %v578_v8 = vsel %vm576_vm8, %v575_v61, %v1346_v50 }
 0x1aa   : > { %v650_v35 = vsel %vm649_vm6, %v1359_v58, %v1398_v30  ;;  %v586_v14 = vmul.f32 %v582_v5, %v578_v8  ;;  %v651_v53 = vsel %vm649_vm6, %v1398_v30, %v1359_v58  ;;  %v619_v58 = vsel %vm617_vm7, %v1367_v6, %v1369_v7 }
 0x1ab   : > { %v659_v37 = vmul.f32 %v655_v26, %v650_v35  ;;  %v660_v59 = vmul.f32 %v656_v31, %v651_v53  ;;  %v644_v30 = vmul.f32 %v640_v33, %v635_v54  ;;  %v628_v34 = vmul.f32 %v624_v21, %v619_v58 }
 0x1ac   : > { %v599_v35 = vperm.slane %v1422_v45, 1  ;;  %v577_v6 = vsel %vm576_vm8, %v1346_v50, %v575_v61 }
 0x1ad   : > { %696 = vmatpush.msra.mxu3 %v659_v37  ;;  %v561_v37 = vsel %vm560_vm10, %v1373_v15, %v1375_v18  ;;  %v936_v18 = vld.sshfl [vmem:[#allocation1 + $0x8] sm:$0xff pattern:$0x75316420] }
 0x1ae   : > { %v571_v39 = vmul.f32 %v567_v36, %v561_v37 }
 0x1af   : > { %697 = vmatpush.msra.mxu3 %v643_v48 }
 0x1b0   : > { %v540_v19 = vpop.permute.xlu0 %539 }
 0x1b1   : > { %698 = vmatpush.msra.mxu3 %v627_v62  ;;  %v591_v3 = vpop.permute.xlu1 %590 }
 0x1b2   : > { %v594_v9 = vsel %vm592_vm9, %v591_v3, %v1371_v10  ;;  %v593_v49 = vsel %vm592_vm9, %v1371_v10, %v591_v3  ;;  %v587_v10 = vmul.f32 %v583_v29, %v577_v6 }
 0x1b3   : > { %699 = vmatpush.msra.mxu3 %v611_v4  ;;  %v602_v11 = vmul.f32 %v598_v63, %v594_v9  ;;  %v603_v7 = vmul.f32 %v599_v35, %v593_v49 }
 0x1b5   : > { %700 = vmatpush.msra.mxu3 %v602_v11 }
 0x1b7   : > { %701 = vmatpush.msra.mxu3 %v586_v14 }
 0x1b8   : > { %v682_v47 = vpop.permute.xlu0 %681 }
 0x1b9   : > { %v542_v20 = vpop.permute.xlu1 %541  ;;  %702 = vmatpush.msra.mxu3 %v570_v16 }
 0x1ba   : > { %v547_v26 = vsel %vm545_vm11, %v542_v20, %v540_v19  ;;  %v546_v46 = vsel %vm545_vm11, %v540_v19, %v542_v20 }
 0x1bb   : > { %v554_v27 = vmul.f32 %v550_v17, %v547_v26  ;;  %v555_v40 = vmul.f32 %v551_v38, %v546_v46 }
 0x1bd   : > { %703 = vmatpush.msra.mxu3 %v554_v27 }
 0x1be   : > { %1054 = vmatmul.msk.f32.vlgmr.msra.gmra.mxu3 %vm684_vm3, %v677_v28 }
 0x1bf   : > { %715 = vmatpush.msrb.mxu3 %v676_v32 }
 0x1c1   : > { %716 = vmatpush.msrb.mxu3 %v660_v59 }
 0x1c3   : > { %717 = vmatpush.msrb.mxu3 %v644_v30 }
 0x1c5   : > { %718 = vmatpush.msrb.mxu3 %v628_v34 }
 0x1c7   : > { %719 = vmatpush.msrb.mxu3 %v612_v22 }
 0x1c9   : > { %720 = vmatpush.msrb.mxu3 %v603_v7 }
 0x1cb   : > { %721 = vmatpush.msrb.mxu3 %v587_v10 }
 0x1cd   : > { %722 = vmatpush.msrb.mxu3 %v571_v39 }
 0x1cf   : > { %723 = vmatpush.msrb.mxu3 %v555_v40 }
 0x1d0   : > { %1055 = vmatmul.msk.f32.vlgmr.msrb.gmra.mxu3 %vm684_vm3, %v677_v28 }
 0x222   : > { %v911_v50 = vpop.f32.mrf.mxu0 }
 0x223   : > { %v941_v43 = vrot.slane %v911_v50, 4 }
 0x225   : > { %v945_v15 = vsel %vm492_vm1, %v935_v42, %v941_v43 }
 0x226   : > { %947 = vst [vmem:[%s474_s22] sm:$0xff] %v945_v15 }
 0x228   : > { %v931_v52 = vpop.f32.mrf.mxu2 }
 0x229   : > { %v942_v44 = vrot.slane %v931_v52, 4 }
 0x22b   : > { %v946_v45 = vsel %vm492_vm1, %v936_v18, %v942_v44 }
 0x22c   : > { %948 = vst [vmem:[%s474_s22 + $0x8] sm:$0xff] %v946_v45 }
 0x241   : > { %v705_v48 = vpop.f32.mrf.mxu3 }
 0x242   : > { %v706_v51 = vadd.f32 %v705_v48, %v682_v47 }
 0x244   : > { %v728_v55 = vmax.f32 %v706_v51, 0.0 }
 0x246   : > { %949 = vst [vmem:[%s474_s22 + $0x10] sm:$0xf] %v728_v55 }
 0x253   : > { %v725_v56 = vpop.f32.mrf.mxu3 }
 0x254   : > { %v726_v57 = vadd.f32 %v725_v56, %v682_v47 }
 0x256   : > { %v729_v60 = vmax.f32 %v726_v57, 0.0 }
 0x258   : > { %950 = vst [vmem:[%s474_s22 + $0x18] sm:$0xf] %v729_v60 }
 0x259 PF: > { %s24_s25 = sadd.s32 1, %s1157_s25  }
 0x25a   : > { %p21_p7 = scmp.ge.s32.totalorder %s24_s25, 4  }
 0x25c   :  { %23 = sbr.rel (!%p21_p7) target bundleno = 1 (0x1), region = 126 }
 0x261   :  { %972 = vsyncpa [#allocation3], 1 }
 0x262   :  { %974 = vsyncpa [#allocation3 + $0x1], 1 }

</bundles_post_ra>
